<compile_context>
chip_gen: v6e
topology: v6e:2x2x1
jax: 0.10.0
libtpu: 0.0.40
codegen_flags: <defaults>
</compile_context>

<pallas_src>
import functools

import jax
import jax.numpy as jnp
from jax.experimental import pallas as pl
from jax.experimental.pallas import tpu as pltpu


# ----------------------------------------------------------------------------
# Kernel 1: ConvTranspose2d(kernel_size=2, stride=2) as one lane-dense matmul.
# ----------------------------------------------------------------------------
def _convt_matmul_kernel(x_ref, w_ref, b_ref, o_ref):
    o_ref[...] = (
        jnp.dot(x_ref[...], w_ref[...],
                preferred_element_type=jnp.float32,
                precision=jax.lax.Precision.HIGHEST)
        + b_ref[...]
    ).astype(o_ref.dtype)


def _convt_matmul(x_rows, w_mat, b_row):
    m, k = x_rows.shape
    n = w_mat.shape[1]
    return pl.pallas_call(
        _convt_matmul_kernel,
        out_shape=jax.ShapeDtypeStruct((m, n), jnp.float32),
        grid=(1,),
        in_specs=[
            pl.BlockSpec((m, k), lambda i: (0, 0)),
            pl.BlockSpec((k, n), lambda i: (0, 0)),
            pl.BlockSpec((1, n), lambda i: (0, 0)),
        ],
        out_specs=pl.BlockSpec((m, n), lambda i: (0, 0)),
    )(x_rows, w_mat, b_row)


# ----------------------------------------------------------------------------
# Kernel 2: fused DoubleConv (conv3x3+BN+ReLU twice) over a flattened,
#           zero-padded NHWC image.  Each conv tap is a constant row offset.
# ----------------------------------------------------------------------------
def _double_conv_kernel(x_ref, w1_ref, b1_ref, w2_ref, b2_ref, o_ref,
                        acc_ref, z_ref, *, wp, n_rows):
    dot = functools.partial(jnp.dot, preferred_element_type=jnp.float32,
                            precision=jax.lax.Precision.HIGHEST)

    # ---- conv1 (+ folded BN1): 9 constant-offset matmuls ----
    acc_ref[...] = jnp.zeros_like(acc_ref)
    for k in range(9):
        off = (k // 3) * wp + (k % 3)
        acc_ref[...] += dot(x_ref[pl.ds(off, n_rows), :], w1_ref[k])
    y1 = jnp.maximum(acc_ref[...] + b1_ref[...], 0.0)

    # The last 2 columns of each flattened output row are wrap-around garbage;
    # zero them -- they land exactly on the zero-padding positions conv2 needs.
    col = jax.lax.broadcasted_iota(jnp.int32, (n_rows, 1), 0) % wp
    y1 = jnp.where(col < wp - 2, y1, 0.0)

    # Re-pad: drop y1 into a zeroed flat buffer shifted by (+1 row, +1 col).
    z_ref[...] = jnp.zeros_like(z_ref)
    z_ref[pl.ds(wp + 1, n_rows), :] = y1

    # ---- conv2 (+ folded BN2) ----
    acc_ref[...] = jnp.zeros_like(acc_ref)
    for k in range(9):
        off = (k // 3) * wp + (k % 3)
        acc_ref[...] += dot(z_ref[pl.ds(off, n_rows), :], w2_ref[k])
    o_ref[...] = jnp.maximum(acc_ref[...] + b2_ref[...], 0.0).astype(o_ref.dtype)


def _double_conv(x_flat, w1f, b1f, w2f, b2f, *, wp, n_rows):
    b, r_in, c_in = x_flat.shape
    c_out = w1f.shape[2]
    kernel = functools.partial(_double_conv_kernel, wp=wp, n_rows=n_rows)
    return pl.pallas_call(
        kernel,
        out_shape=jax.ShapeDtypeStruct((b, n_rows, c_out), jnp.float32),
        grid=(b,),
        in_specs=[
            pl.BlockSpec((None, r_in, c_in), lambda i: (i, 0, 0)),   # padded image
            pl.BlockSpec((9, c_in, c_out), lambda i: (0, 0, 0)),     # conv1 (BN folded)
            pl.BlockSpec((1, c_out), lambda i: (0, 0)),
            pl.BlockSpec((9, c_out, c_out), lambda i: (0, 0, 0)),    # conv2 (BN folded)
            pl.BlockSpec((1, c_out), lambda i: (0, 0)),
        ],
        out_specs=pl.BlockSpec((None, n_rows, c_out), lambda i: (i, 0, 0)),
        scratch_shapes=[
            pltpu.VMEM((n_rows, c_out), jnp.float32),   # f32 conv accumulator
            pltpu.VMEM((r_in, c_out), jnp.float32),     # re-padded conv1 output
        ],
        compiler_params=pltpu.CompilerParams(
            dimension_semantics=("parallel",)),
    )(x_flat, w1f, b1f, w2f, b2f)


# ----------------------------------------------------------------------------
# Wrapper: forward pass of the torch `Up` module (NCHW in / NCHW out).
# ----------------------------------------------------------------------------
def up_forward(x1, x2, wt, bt, w1, bn1, w2, bn2, eps=1e-5):
    """x1: (B, Cin, H, W); x2: (B, Cin//2, 2H, 2W);
    wt: (Cin, Cin//2, 2, 2) torch ConvTranspose2d weight; bt: (Cin//2,);
    w1: (Cout, Cin, 3, 3); w2: (Cout, Cout, 3, 3); bn* = (gamma, beta, mean, var).
    Returns (B, Cout, 2H, 2W)."""
    B, cin, H, W = x1.shape
    cmid = cin // 2
    h2, w2s = 2 * H, 2 * W
    cout = w1.shape[0]

    # ---- ConvTranspose2d(k=2, s=2) as one matmul (Pallas kernel 1) ----
    x1_rows = jnp.transpose(x1, (0, 2, 3, 1)).reshape(B * H * W, cin)
    wt_mat = jnp.transpose(wt, (0, 2, 3, 1)).reshape(cin, 4 * cmid)  # (ci,(di,dj,co))
    bt_row = jnp.tile(bt, 4).reshape(1, 4 * cmid)
    up_rows = _convt_matmul(x1_rows, wt_mat, bt_row)                 # (B*H*W, 4*cmid)

    # ---- layout glue (XLA): stride-2 interleave, concat, zero pad, flatten ----
    up = up_rows.reshape(B, H, W, 2, 2, cmid).transpose(0, 1, 3, 2, 4, 5)
    up = up.reshape(B, h2, w2s, cmid)
    x2_nhwc = jnp.transpose(x2, (0, 2, 3, 1))
    xcat = jnp.concatenate([x2_nhwc, up], axis=-1)                   # (B, 2H, 2W, cin)
    xpad = jnp.pad(xcat, ((0, 0), (1, 2), (1, 1), (0, 0)))           # (B, 2H+3, 2W+2, cin)
    wp = w2s + 2
    r_in = (h2 + 3) * wp
    n_rows = h2 * wp
    x_flat = xpad.reshape(B, r_in, cin)

    # ---- fold eval-mode BatchNorm into the conv weights ----
    # TODO(synk): training-mode BatchNorm (batch statistics) is not computed
    # in-kernel; running statistics (eval mode) are folded into the weights.
    def fold(w, bn):
        gamma, beta, mean, var = bn
        scale = gamma / jnp.sqrt(var + eps)
        wf = jnp.transpose(w, (2, 3, 1, 0)).reshape(9, w.shape[1], w.shape[0])
        return wf * scale[None, None, :], (beta - mean * scale).reshape(1, -1)

    w1f, b1f = fold(w1, bn1)
    w2f, b2f = fold(w2, bn2)

    # ---- fused DoubleConv (Pallas kernel 2) ----
    y_flat = _double_conv(x_flat, w1f, b1f, w2f, b2f, wp=wp, n_rows=n_rows)
    y = y_flat.reshape(B, h2, wp, cout)[:, :, :w2s, :]
    return jnp.transpose(y, (0, 3, 1, 2))


# ----------------------------------------------------------------------------
# Pure-JAX reference (independent formulation: einsum + conv_general_dilated).
# ----------------------------------------------------------------------------
def _reference(x1, x2, wt, bt, w1, bn1, w2, bn2, eps=1e-5):
    B, cin, H, W = x1.shape
    cmid = cin // 2
    t = jnp.einsum('ncij,copq->noipjq', x1, wt,
                   precision=jax.lax.Precision.HIGHEST)
    up = t.reshape(B, cmid, 2 * H, 2 * W) + bt[None, :, None, None]
    x = jnp.concatenate([x2, up], axis=1)

    def conv_bn_relu(v, w, bn):
        gamma, beta, mean, var = bn
        y = jax.lax.conv_general_dilated(
            v, w, window_strides=(1, 1), padding=((1, 1), (1, 1)),
            dimension_numbers=('NCHW', 'OIHW', 'NCHW'),
            precision=jax.lax.Precision.HIGHEST)
        y = (y - mean[None, :, None, None]) * (
            gamma[None, :, None, None] / jnp.sqrt(var[None, :, None, None] + eps)
        ) + beta[None, :, None, None]
        return jnp.maximum(y, 0.0)

    x = conv_bn_relu(x, w1, bn1)
    x = conv_bn_relu(x, w2, bn2)
    return x


if __name__ == "__main__":
    B = 2
    CIN = 64            # in_channels of the Up block (x1 channels)
    COUT = 64           # out_channels
    H = W = 8           # x1 spatial; x2 / output are 16 x 16
    CMID = CIN // 2

    key = jax.random.PRNGKey(0)
    ks = jax.random.split(key, 14)
    normal = jax.random.normal

    x1 = normal(ks[0], (B, CIN, H, W), jnp.float32)
    x2 = normal(ks[1], (B, CMID, 2 * H, 2 * W), jnp.float32)

    # ConvTranspose2d(CIN, CMID, kernel_size=2, stride=2) params (torch layout).
    wt = 0.1 * normal(ks[2], (CIN, CMID, 2, 2), jnp.float32)
    bt = 0.1 * normal(ks[3], (CMID,), jnp.float32)

    # DoubleConv: conv1 (COUT, CIN, 3, 3) + BN1, conv2 (COUT, COUT, 3, 3) + BN2.
    w1 = 0.1 * normal(ks[4], (COUT, CIN, 3, 3), jnp.float32)
    bn1 = (1.0 + 0.1 * normal(ks[5], (COUT,), jnp.float32),       # gamma
           0.1 * normal(ks[6], (COUT,), jnp.float32),             # beta
           0.1 * normal(ks[7], (COUT,), jnp.float32),             # running mean
           0.5 + jnp.abs(normal(ks[8], (COUT,), jnp.float32)))    # running var
    w2 = 0.1 * normal(ks[9], (COUT, COUT, 3, 3), jnp.float32)
    bn2 = (1.0 + 0.1 * normal(ks[10], (COUT,), jnp.float32),
           0.1 * normal(ks[11], (COUT,), jnp.float32),
           0.1 * normal(ks[12], (COUT,), jnp.float32),
           0.5 + jnp.abs(normal(ks[13], (COUT,), jnp.float32)))

    out = up_forward(x1, x2, wt, bt, w1, bn1, w2, bn2)
    out = jax.block_until_ready(out)

    ref = _reference(x1, x2, wt, bt, w1, bn1, w2, bn2)
    assert out.shape == (B, COUT, 2 * H, 2 * W), out.shape
    assert jnp.allclose(out, ref, atol=1e-2, rtol=1e-2), (
        float(jnp.max(jnp.abs(out - ref))))
    print("KERNEL_OK")
</pallas_src>

<mosaic_0001>
module attributes {stable_mosaic.version = 11 : i64} {
  func.func @_convt_matmul_kernel(%arg0: i32, %arg1: memref<128x64xf32, #tpu.memory_space<vmem>>, %arg2: memref<64x128xf32, #tpu.memory_space<vmem>>, %arg3: memref<1x128xf32, #tpu.memory_space<vmem>>, %arg4: memref<128x128xf32, #tpu.memory_space<vmem>>) attributes {dimension_semantics = [#tpu.dimension_semantics<arbitrary>], iteration_bounds = array<i64: 1>, scalar_prefetch = 0 : i64, scratch_operands = 0 : i64, tpu.core_type = #tpu.core_type<tc>, window_params = [{pipeline_mode = #tpu.pipeline_mode<synchronous>, transform_indices = @transform_0, window_bounds = array<i64: 128, 64>}, {pipeline_mode = #tpu.pipeline_mode<synchronous>, transform_indices = @transform_1, window_bounds = array<i64: 64, 128>}, {pipeline_mode = #tpu.pipeline_mode<synchronous>, transform_indices = @transform_2, window_bounds = array<i64: 1, 128>}, {pipeline_mode = #tpu.pipeline_mode<synchronous>, transform_indices = @transform_3, window_bounds = array<i64: 128, 128>}]} {
    %c0 = arith.constant 0 : index
    %c0_0 = arith.constant 0 : index
    %0 = vector.load %arg1[%c0, %c0_0] : memref<128x64xf32, #tpu.memory_space<vmem>>, vector<128x64xf32>
    %c0_1 = arith.constant 0 : index
    %c0_2 = arith.constant 0 : index
    %1 = vector.load %arg2[%c0_1, %c0_2] : memref<64x128xf32, #tpu.memory_space<vmem>>, vector<64x128xf32>
    %cst = arith.constant dense<0.000000e+00> : vector<128x128xf32>
    %2 = tpu.matmul %0, %1, %cst {dimension_numbers = #tpu.dot_dimension_numbers<[1], [0], [0], [1], [0, 0, 1, 1], [], []>, precision = #tpu.contract_precision<fp32>} : vector<128x64xf32>, vector<64x128xf32>, vector<128x128xf32> -> vector<128x128xf32>
    %c0_3 = arith.constant 0 : index
    %c0_4 = arith.constant 0 : index
    %3 = vector.load %arg3[%c0_3, %c0_4] : memref<1x128xf32, #tpu.memory_space<vmem>>, vector<1x128xf32>
    %4 = vector.broadcast %3 : vector<1x128xf32> to vector<128x128xf32>
    %5 = arith.addf %2, %4 : vector<128x128xf32>
    %c0_5 = arith.constant 0 : index
    %c0_6 = arith.constant 0 : index
    %6 = vector.load %arg4[%c0_5, %c0_6] : memref<128x128xf32, #tpu.memory_space<vmem>>, vector<128x128xf32>
    tpu.vector_store %arg4[%c0_5, %c0_6], %5 {strides = array<i32>} : memref<128x128xf32, #tpu.memory_space<vmem>>, vector<128x128xf32>,
    return
  }
  func.func @transform_0(%arg0: i32) -> (i32, i32) {
    %c0_i32 = arith.constant 0 : i32
    %c0_i32_0 = arith.constant 0 : i32
    %c0_i32_1 = arith.constant 0 : i32
    return %c0_i32, %c0_i32_0 : i32, i32
  }
  func.func @transform_1(%arg0: i32) -> (i32, i32) {
    %c0_i32 = arith.constant 0 : i32
    %c0_i32_0 = arith.constant 0 : i32
    %c0_i32_1 = arith.constant 0 : i32
    return %c0_i32, %c0_i32_0 : i32, i32
  }
  func.func @transform_2(%arg0: i32) -> (i32, i32) {
    %c0_i32 = arith.constant 0 : i32
    %c0_i32_0 = arith.constant 0 : i32
    %c0_i32_1 = arith.constant 0 : i32
    return %c0_i32, %c0_i32_0 : i32, i32
  }
  func.func @transform_3(%arg0: i32) -> (i32, i32) {
    %c0_i32 = arith.constant 0 : i32
    %c0_i32_0 = arith.constant 0 : i32
    %c0_i32_1 = arith.constant 0 : i32
    return %c0_i32, %c0_i32_0 : i32, i32
  }
}

</mosaic_0001>

<bundles_post_ra>
// kernel: tpu_custom_call.1
= control target key start
LH: loop header
LB: loop body
LE: loop exit
PB: predicated region body
PF: predicated region fallthrough
CT: control target
= control target key end

     0   :  { %vm46_vm0 = vcmask 523264   ;;  %s2415_s0 = inlined_call_operand.vmem [shape: f32[128,64], index: 0, kind: input, shape index: {}]   ;;  %s2416_s1 = inlined_call_operand.vmem [shape: f32[64,128], index: 1, kind: input, shape index: {}]   ;;  %s2417_s2 = inlined_call_operand.vmem [shape: f32[1,128], index: 2, kind: input, shape index: {}]   ;;  %s2418_s3 = inlined_call_operand.hbm [shape: f32[128,128], index: 3, kind: output, shape index: {}]  }
   0x1   :  { %v38_v0 = vld [vmem:[%s2416_s1 + $0x38] sm:$0xff]  ;;  %v37_v1 = vld [vmem:[%s2416_s1 + $0x30] sm:$0xff]  ;;  %v36_v2 = vld [vmem:[%s2416_s1 + $0x28] sm:$0xff] }
   0x2   :  { %v1751_v3 = vand.u32 4294901760, %v38_v0  ;;  %v1753_v4 = vand.u32 4294901760, %v37_v1  ;;  %v1755_v5 = vand.u32 4294901760, %v36_v2  ;;  %v35_v6 = vld [vmem:[%s2416_s1 + $0x20] sm:$0xff]  ;;  %v34_v7 = vld [vmem:[%s2416_s1 + $0x18] sm:$0xff]  ;;  %v33_v8 = vld [vmem:[%s2416_s1 + $0x10] sm:$0xff] }
   0x3   :  { %v1766_v9 = vand.u32 4294901760, %v35_v6  ;;  %v1768_v10 = vand.u32 4294901760, %v34_v7  ;;  %v1770_v11 = vand.u32 4294901760, %v33_v8  ;;  %v32_v12 = vld [vmem:[%s2416_s1 + $0x8] sm:$0xff]  ;;  %v1778_v13 = vld [vmem:[%s2416_s1] sm:$0xff]  ;;  %v17_v40 = vld [vmem:[%s2415_s0 + $0x10] sm:$0xff] }
   0x4   :  { %v15_v14 = vld [vmem:[%s2415_s0] sm:$0xff]  ;;  %1454 = vmatprep.subr.mxu0 %v1751_v3  ;;  %v1785_v15 = vsub.f32 %v38_v0, %v1751_v3  ;;  %v1788_v16 = vsub.f32 %v37_v1, %v1753_v4  ;;  %v1790_v17 = vand.u32 4294901760, %v32_v12  ;;  %v1793_v18 = vsub.f32 %v36_v2, %v1755_v5  ;;  %v16_v19 = vld [vmem:[%s2415_s0 + $0x8] sm:$0xff]  ;;  %v18_v41 = vld [vmem:[%s2415_s0 + $0x18] sm:$0xff] }
   0x5   :  { %1455 = vmatpush3.msra.mxu0 %v1751_v3  ;;  %v1800_v20 = vand.u32 4294901760, %v1778_v13  ;;  %v1803_v21 = vsub.f32 %v35_v6, %v1766_v9  ;;  %v48_v22 = vsel %vm46_vm0, %v15_v14, 0  ;;  %v51_v23 = vsel %vm46_vm0, %v16_v19, 0 }
   0x6   :  { %1456 = vmatprep.subr.mxu0 %v1753_v4  ;;  %v1809_v24 = vand.u32 4294901760, %v1785_v15  ;;  %v1812_v25 = vand.u32 4294901760, %v1788_v16  ;;  %v1815_v26 = vand.u32 4294901760, %v1793_v18  ;;  %v1817_v27 = vand.u32 4294901760, %v48_v22 }
   0x7   :  { %1457 = vmatpush3.msra.mxu0 %v1753_v4  ;;  %v1821_v28 = vand.u32 4294901760, %v1803_v21  ;;  %v1823_v29 = vand.u32 4294901760, %v51_v23  ;;  %v1826_v30 = vsub.f32 %v34_v7, %v1768_v10  ;;  %v1829_v31 = vsub.f32 %v33_v8, %v1770_v11 }
   0x8   :  { %1458 = vmatprep.subr.mxu0 %v1755_v5  ;;  %v348_v32 = vsub.f32 %v1785_v15, %v1809_v24  ;;  %v355_v33 = vsub.f32 %v1788_v16, %v1812_v25  ;;  %v362_v34 = vsub.f32 %v1793_v18, %v1815_v26  ;;  %v1839_v35 = vsub.f32 %v48_v22, %v1817_v27 }
   0x9   :  { %1459 = vmatpush3.msra.mxu0 %v1755_v5  ;;  %v369_v36 = vsub.f32 %v1803_v21, %v1821_v28  ;;  %v1845_v37 = vsub.f32 %v51_v23, %v1823_v29  ;;  %v1848_v38 = vand.u32 4294901760, %v1826_v30  ;;  %v1851_v39 = vand.u32 4294901760, %v1829_v31  ;;  %1510 = vmatprep.mubr.f32.mxu1 %v1817_v27 }
   0xa   :  { %8 = vsyncpa [#allocation3], 0  ;;  %1460 = vmatprep.subr.mxu0 %v1766_v9  ;;  %v349_v42 = vand.u32 4294901760, %v348_v32  ;;  %v356_v43 = vand.u32 4294901760, %v355_v33  ;;  %v363_v44 = vand.u32 4294901760, %v362_v34  ;;  %v2428_v45 = vand.u32 4294901760, %v1839_v35 }
   0xb   :  { %1461 = vmatpush3.msra.mxu0 %v1766_v9  ;;  %v370_v46 = vand.u32 4294901760, %v369_v36  ;;  %v2426_v47 = vand.u32 4294901760, %v1845_v37  ;;  %v376_v48 = vsub.f32 %v1826_v30, %v1848_v38  ;;  %v383_v49 = vsub.f32 %v1829_v31, %v1851_v39  ;;  %v19_v54 = vld [vmem:[%s2415_s0 + $0x20] sm:$0xff]  ;;  %v20_v55 = vld [vmem:[%s2415_s0 + $0x28] sm:$0xff]  ;;  %v21_v0 = vld [vmem:[%s2415_s0 + $0x30] sm:$0xff] }
   0xc   :  { %1462 = vmatprep.subr.mxu0 %v1768_v10  ;;  %1494 = vmatprep.subr.mxu1 %v349_v42  ;;  %v171_v50 = vsub.f32 %v1839_v35, %v2428_v45  ;;  %v54_v51 = vsel %vm46_vm0, %v17_v40, 0  ;;  %v57_v52 = vsel %vm46_vm0, %v18_v41, 0  ;;  %v1875_v53 = vsub.f32 %v32_v12, %v1790_v17  ;;  %v22_v1 = vld [vmem:[%s2415_s0 + $0x38] sm:$0xff]  ;;  %v23_v34 = vld [vmem:[%s2415_s0 + $0x40] sm:$0xff] }
   0xd   :  { %1463 = vmatpush3.msra.mxu0 %v1768_v10  ;;  %1495 = vmatpush3.msra.mxu1 %v349_v42  ;;  %v181_v56 = vsub.f32 %v1845_v37, %v2426_v47  ;;  %v377_v57 = vand.u32 4294901760, %v376_v48  ;;  %v1887_v58 = vand.u32 4294901760, %v383_v49  ;;  %v1889_v59 = vand.u32 4294901760, %v54_v51 }
   0xe   :  { %1464 = vmatprep.subr.mxu0 %v1770_v11  ;;  %1496 = vmatprep.subr.mxu1 %v356_v43  ;;  %v172_v60 = vand.u32 4294901760, %v171_v50  ;;  %v1892_v61 = vand.u32 4294901760, %v57_v52  ;;  %v1895_v62 = vand.u32 4294901760, %v1875_v53  ;;  %v1899_v63 = vsub.f32 %v1778_v13, %v1800_v20  ;;  %v24_v50 = vld [vmem:[%s2415_s0 + $0x48] sm:$0xff] }
   0xf   :  { %1465 = vmatpush3.msra.mxu0 %v1770_v11  ;;  %1497 = vmatpush3.msra.mxu1 %v356_v43  ;;  %v182_v2 = vand.u32 4294901760, %v181_v56  ;;  %v1909_v6 = vsub.f32 %v54_v51, %v1889_v59  ;;  %v60_v7 = vsel %vm46_vm0, %v19_v54, 0  ;;  %v63_v8 = vsel %vm46_vm0, %v20_v55, 0 }
  0x10   :  { %1466 = vmatprep.subr.mxu0 %v1790_v17  ;;  %1498 = vmatprep.subr.mxu1 %v363_v44  ;;  %v1915_v12 = vsub.f32 %v57_v52, %v1892_v61  ;;  %v390_v13 = vsub.f32 %v1875_v53, %v1895_v62  ;;  %v1920_v14 = vand.u32 4294901760, %v1899_v63  ;;  %v1922_v19 = vand.u32 4294901760, %v60_v7 }
  0x11   :  { %1467 = vmatpush3.msra.mxu0 %v1790_v17  ;;  %1499 = vmatpush3.msra.mxu1 %v363_v44  ;;  %v2424_v22 = vand.u32 4294901760, %v1909_v6  ;;  %v1926_v23 = vand.u32 4294901760, %v63_v8  ;;  %v66_v32 = vsel %vm46_vm0, %v21_v0, 0  ;;  %v69_v33 = vsel %vm46_vm0, %v22_v1, 0  ;;  %v25_v1 = vld [vmem:[%s2415_s0 + $0x50] sm:$0xff] }
  0x12   :  { %2433 = vst [vmem:[#allocation5_spill] sm:$0xff] %v1922_v19  ;;  %1468 = vmatprep.subr.mxu0 %v1800_v20  ;;  %1500 = vmatprep.subr.mxu1 %v370_v46  ;;  %v2423_v36 = vand.u32 4294901760, %v1915_v12  ;;  %v391_v40 = vand.u32 4294901760, %v390_v13  ;;  %v397_v41 = vsub.f32 %v1899_v63, %v1920_v14  ;;  %v1938_v42 = vsub.f32 %v60_v7, %v1922_v19 }
  0x13   :  { %1469 = vmatpush3.msra.mxu0 %v1800_v20  ;;  %1470 = vmatprep.mubr.f32.mxu0 %v172_v60  ;;  %v191_v43 = vsub.f32 %v1909_v6, %v2424_v22  ;;  %v1945_v44 = vsub.f32 %v63_v8, %v1926_v23  ;;  %v1947_v48 = vand.u32 4294901760, %v66_v32  ;;  %v1949_v49 = vand.u32 4294901760, %v69_v33 }
  0x14   :  { %1501 = vmatpush3.msra.mxu1 %v370_v46  ;;  %1471 = vmatmul.mubr.f32.vlgmr.msra.gmra.mxu0 %v182_v2  ;;  %v201_v51 = vsub.f32 %v1915_v12, %v2423_v36  ;;  %v398_v52 = vand.u32 4294901760, %v397_v41  ;;  %v2420_v54 = vand.u32 4294901760, %v1938_v42  ;;  %v72_v55 = vsel %vm46_vm0, %v23_v34, 0  ;;  %v26_v2 = vld [vmem:[%s2415_s0 + $0x58] sm:$0xff] }
  0x15   :  { %1502 = vmatprep.subr.mxu1 %v377_v57  ;;  %v192_v56 = vand.u32 4294901760, %v191_v43  ;;  %1534 = vmatprep.subr.mxu0 %v1785_v15  ;;  %v2419_v60 = vand.u32 4294901760, %v1945_v44  ;;  %v1962_v0 = vsub.f32 %v66_v32, %v1947_v48  ;;  %v1965_v46 = vsub.f32 %v69_v33, %v1949_v49 }
  0x16   :  { %1503 = vmatpush3.msra.mxu1 %v377_v57  ;;  %v202_v7 = vand.u32 4294901760, %v201_v51  ;;  %v211_v8 = vsub.f32 %v1938_v42, %v2420_v54  ;;  %1535 = vmatpush3.msra.mxu0 %v1785_v15  ;;  %v1977_v13 = vand.u32 4294901760, %v72_v55  ;;  %v75_v32 = vsel %vm46_vm0, %v24_v50, 0  ;;  %v27_v15 = vld [vmem:[%s2415_s0 + $0x60] sm:$0xff] }
  0x17   :  { %1504 = vmatprep.subr.mxu1 %v1887_v58  ;;  %1473 = vmatprep.mubr.f32.mxu0 %v192_v56  ;;  %v221_v33 = vsub.f32 %v1945_v44, %v2419_v60  ;;  %v2422_v57 = vand.u32 4294901760, %v1962_v0  ;;  %v2421_v34 = vand.u32 4294901760, %v1965_v46  ;;  %v1986_v41 = vand.u32 4294901760, %v75_v32 }
  0x18   :  { %1505 = vmatpush3.msra.mxu1 %v1887_v58  ;;  %1474 = vmatmul.mubr.f32.gmra.mxu0 %v202_v7  ;;  %v212_v43 = vand.u32 4294901760, %v211_v8  ;;  %v1993_v50 = vsub.f32 %v72_v55, %v1977_v13  ;;  %v78_v51 = vsel %vm46_vm0, %v25_v1, 0  ;;  %v81_v56 = vsel %vm46_vm0, %v26_v2, 0  ;;  %v28_v55 = vld [vmem:[%s2415_s0 + $0x68] sm:$0xff] }
  0x19   :  { %1506 = vmatprep.subr.mxu1 %v391_v40  ;;  %v222_v60 = vand.u32 4294901760, %v221_v33  ;;  %1536 = vmatprep.subr.mxu0 %v1788_v16  ;;  %v231_v54 = vsub.f32 %v1962_v0, %v2422_v57  ;;  %v241_v58 = vsub.f32 %v1965_v46, %v2421_v34  ;;  %v2005_v7 = vsub.f32 %v75_v32, %v1986_v41  ;;  %v29_v34 = vld [vmem:[%s2415_s0 + $0x70] sm:$0xff] }
  0x1a   :  { %1507 = vmatpush3.msra.mxu1 %v391_v40  ;;  %1476 = vmatprep.mubr.f32.mxu0 %v212_v43  ;;  %v2425_v1 = vand.u32 4294901760, %v1993_v50  ;;  %v2011_v2 = vand.u32 4294901760, %v78_v51  ;;  %v2013_v8 = vand.u32 4294901760, %v81_v56  ;;  %v84_v33 = vsel %vm46_vm0, %v27_v15, 0 }
  0x1b   :  { %1508 = vmatprep.subr.mxu1 %v398_v52  ;;  %v232_v32 = vand.u32 4294901760, %v231_v54  ;;  %1537 = vmatpush3.msra.mxu0 %v1788_v16  ;;  %v242_v57 = vand.u32 4294901760, %v241_v58  ;;  %v2427_v40 = vand.u32 4294901760, %v2005_v7  ;;  %v2021_v43 = vand.u32 4294901760, %v84_v33  ;;  %v30_v16 = vld [vmem:[%s2415_s0 + $0x78] sm:$0xff] }
  0x1c   :  { %1509 = vmatpush3.msra.mxu1 %v398_v52  ;;  %1477 = vmatmul.mubr.f32.gmra.mxu0 %v222_v60  ;;  %v251_v36 = vsub.f32 %v1993_v50, %v2425_v1  ;;  %v2027_v15 = vsub.f32 %v78_v51, %v2011_v2  ;;  %v2030_v22 = vsub.f32 %v81_v56, %v2013_v8  ;;  %v87_v54 = vsel %vm46_vm0, %v28_v55, 0 }
  0x1d   :  { %1511 = vmatmul.mubr.f32.vlgmr.msra.gmra.mxu1 %v1823_v29  ;;  %1574 = vmatprep.subr.mxu1 %v1751_v3  ;;  %v261_v52 = vsub.f32 %v2005_v7, %v2427_v40  ;;  %v2042_v60 = vsub.f32 %v84_v33, %v2021_v43  ;;  %v2044_v51 = vand.u32 4294901760, %v87_v54  ;;  %v90_v56 = vsel %vm46_vm0, %v29_v34, 0 }
  0x1e   :  { %1575 = vmatpush3.msra.mxu1 %v1751_v3  ;;  %1479 = vmatprep.mubr.f32.mxu0 %v232_v32  ;;  %v252_v58 = vand.u32 4294901760, %v251_v36  ;;  %v2429_v55 = vand.u32 4294901760, %v2027_v15  ;;  %v2430_v1 = vand.u32 4294901760, %v2030_v22  ;;  %v2050_v47 = vand.u32 4294901760, %v90_v56 }
  0x1f   :  { %1513 = vmatprep.mubr.f32.mxu1 %v1889_v59  ;;  %1576 = vmatprep.subr.mxu1 %v1753_v4  ;;  %v262_v33 = vand.u32 4294901760, %v261_v52  ;;  %v2056_v45 = vsub.f32 %v87_v54, %v2044_v51  ;;  %v93_v34 = vsel %vm46_vm0, %v30_v16, 0  ;;  %v2434_v16 = vand.u32 4294901760, %v2042_v60 }
  0x20   :  { %1480 = vmatmul.mubr.f32.gmra.mxu0 %v242_v57  ;;  %1577 = vmatpush3.msra.mxu1 %v1753_v4  ;;  %v271_v36 = vsub.f32 %v2027_v15, %v2429_v55  ;;  %v281_v32 = vsub.f32 %v2030_v22, %v2430_v1  ;;  %v2067_v52 = vsub.f32 %v90_v56, %v2050_v47  ;;  %v2069_v40 = vand.u32 4294901760, %v93_v34 }
  0x21   :  { %1514 = vmatmul.mubr.f32.gmra.mxu1 %v1892_v61  ;;  %1538 = vmatprep.subr.mxu0 %v1793_v18  ;;  %v300_v57 = vand.u32 4294901760, %v2056_v45  ;;  %v291_v55 = vsub.f32 %v2042_v60, %v2434_v16 }
  0x22   :  { %1482 = vmatprep.mubr.f32.mxu0 %v252_v58  ;;  %1516 = vmatprep.mubr.f32.mxu1 %v1922_v19  ;;  %v272_v54 = vand.u32 4294901760, %v271_v36  ;;  %v310_v1 = vand.u32 4294901760, %v2067_v52  ;;  %v2080_v56 = vsub.f32 %v93_v34, %v2069_v40  ;;  %v282_v58 = vand.u32 4294901760, %v281_v32 }
  0x23   :  { %1539 = vmatpush3.msra.mxu0 %v1793_v18  ;;  %1578 = vmatprep.subr.mxu1 %v1755_v5  ;;  %v301_v36 = vsub.f32 %v2056_v45, %v300_v57  ;;  %v292_v18 = vand.u32 4294901760, %v291_v55 }
  0x24   :  { %1483 = vmatmul.mubr.f32.gmra.mxu0 %v262_v33  ;;  %1579 = vmatpush3.msra.mxu1 %v1755_v5  ;;  %v320_v19 = vand.u32 4294901760, %v2080_v56  ;;  %v311_v33 = vsub.f32 %v2067_v52, %v310_v1 }
  0x25   :  { %1517 = vmatmul.mubr.f32.gmra.mxu1 %v1926_v23  ;;  %1540 = vmatprep.subr.mxu0 %v1803_v21  ;;  %v302_v34 = vand.u32 4294901760, %v301_v36 }
  0x26   :  { %1485 = vmatprep.mubr.f32.mxu0 %v272_v54  ;;  %1519 = vmatprep.mubr.f32.mxu1 %v1947_v48  ;;  %v321_v32 = vsub.f32 %v2080_v56, %v320_v19  ;;  %v312_v55 = vand.u32 4294901760, %v311_v33 }
  0x27   :  { %1541 = vmatpush3.msra.mxu0 %v1803_v21  ;;  %1580 = vmatprep.subr.mxu1 %v1766_v9 }
  0x28   :  { %1486 = vmatmul.mubr.f32.gmra.mxu0 %v282_v58  ;;  %1581 = vmatpush3.msra.mxu1 %v1766_v9  ;;  %v322_v21 = vand.u32 4294901760, %v321_v32 }
  0x29   :  { %1520 = vmatmul.mubr.f32.gmra.mxu1 %v1949_v49  ;;  %1542 = vmatprep.subr.mxu0 %v1826_v30 }
  0x2a   :  { %1488 = vmatprep.mubr.f32.mxu0 %v292_v18  ;;  %1522 = vmatprep.mubr.f32.mxu1 %v1977_v13 }
  0x2b   :  { %1543 = vmatpush3.msra.mxu0 %v1826_v30  ;;  %1582 = vmatprep.subr.mxu1 %v1768_v10  ;;  %v2435_v30 = vand.u32 4294901760, %v1839_v35 }
  0x2c   :  { %1489 = vmatmul.mubr.f32.gmra.mxu0 %v302_v34  ;;  %1583 = vmatpush3.msra.mxu1 %v1768_v10 }
  0x2d   :  { %1523 = vmatmul.mubr.f32.gmra.mxu1 %v1986_v41  ;;  %1544 = vmatprep.subr.mxu0 %v1829_v31 }
  0x2e   :  { %1491 = vmatprep.mubr.f32.mxu0 %v312_v55  ;;  %1525 = vmatprep.mubr.f32.mxu1 %v2011_v2 }
  0x2f   :  { %1545 = vmatpush3.msra.mxu0 %v1829_v31  ;;  %1584 = vmatprep.subr.mxu1 %v1770_v11  ;;  %v2436_v31 = vand.u32 4294901760, %v1845_v37 }
  0x30   :  { %1492 = vmatmul.mubr.f32.gmra.mxu0 %v322_v21  ;;  %1546 = vmatprep.subr.mxu0 %v1875_v53 }
  0x31   :  { %1526 = vmatmul.mubr.f32.gmra.mxu1 %v2013_v8  ;;  %1547 = vmatpush3.msra.mxu0 %v1875_v53  ;;  %v2437_v53 = vand.u32 4294901760, %v1909_v6 }
  0x32   :  { %1585 = vmatpush3.msra.mxu1 %v1770_v11  ;;  %1548 = vmatprep.subr.mxu0 %v1899_v63 }
  0x33   :  { %1528 = vmatprep.mubr.f32.mxu1 %v2021_v43  ;;  %1549 = vmatpush3.msra.mxu0 %v1899_v63 }
  0x34   :  { %1550 = vmatprep.mubr.f32.mxu0 %v1839_v35  ;;  %1586 = vmatprep.subr.mxu1 %v1790_v17  ;;  %v2446_v35 = vand.u32 4294901760, %v2030_v22 }
  0x35   :  { %1529 = vmatmul.mubr.f32.gmra.mxu1 %v2044_v51  ;;  %1551 = vmatmul.mubr.f32.vlgmr.msra.gmra.mxu0 %v1845_v37 }
  0x36   :  { %1587 = vmatpush3.msra.mxu1 %v1790_v17  ;;  %1531 = vmatprep.mubr.f32.mxu1 %v2050_v47 }
  0x37   :  { %1553 = vmatprep.mubr.f32.mxu0 %v1909_v6  ;;  %1588 = vmatprep.subr.mxu1 %v1800_v20 }
  0x38   :  { %1589 = vmatpush3.msra.mxu1 %v1800_v20  ;;  %1614 = vmatprep.subr.mxu0 %v1809_v24 }
  0x39   :  { %1532 = vmatmul.mubr.f32.gmra.mxu1 %v2069_v40  ;;  %1554 = vmatmul.mubr.f32.gmra.mxu0 %v1915_v12 }
  0x3a   :  { %1556 = vmatprep.mubr.f32.mxu0 %v1938_v42  ;;  %1590 = vmatprep.mubr.f32.mxu1 %v2435_v30 }
  0x3b   :  { %1615 = vmatpush3.msra.mxu0 %v1809_v24  ;;  %1654 = vmatprep.subr.mxu1 %v1751_v3  ;;  %v2438_v24 = vand.u32 4294901760, %v1915_v12 }
  0x3c   :  { %1616 = vmatprep.subr.mxu0 %v1812_v25 }
  0x3d   :  { %1557 = vmatmul.mubr.f32.gmra.mxu0 %v1945_v44  ;;  %1591 = vmatmul.mubr.f32.vlgmr.msra.gmra.mxu1 %v2436_v31 }
  0x3e   :  { %1655 = vmatpush3.msra.mxu1 %v1751_v3  ;;  %1559 = vmatprep.mubr.f32.mxu0 %v1962_v0  ;;  %v2439_v3 = vand.u32 4294901760, %v1938_v42 }
  0x3f   :  { %1593 = vmatprep.mubr.f32.mxu1 %v2437_v53  ;;  %1617 = vmatpush3.msra.mxu0 %v1812_v25  ;;  %v2440_v25 = vand.u32 4294901760, %v1945_v44 }
  0x40   :  { %1656 = vmatprep.subr.mxu1 %v1753_v4  ;;  %1618 = vmatprep.subr.mxu0 %v1815_v26 }
  0x41   :  { %1560 = vmatmul.mubr.f32.gmra.mxu0 %v1965_v46  ;;  %1594 = vmatmul.mubr.f32.gmra.mxu1 %v2438_v24 }
  0x42   :  { %1657 = vmatpush3.msra.mxu1 %v1753_v4  ;;  %1562 = vmatprep.mubr.f32.mxu0 %v1993_v50  ;;  %v2441_v4 = vand.u32 4294901760, %v1962_v0 }
  0x43   :  { %1596 = vmatprep.mubr.f32.mxu1 %v2439_v3  ;;  %1619 = vmatpush3.msra.mxu0 %v1815_v26  ;;  %v2442_v26 = vand.u32 4294901760, %v1965_v46  ;;  %v2323_v3 = vld [vmem:[%s2417_s2] ss:$0 sm:$0xff]  ;;  %s1719_s2 = smov [#allocation2]  }
  0x44   :  { %1658 = vmatprep.subr.mxu1 %v1755_v5  ;;  %1620 = vmatprep.subr.mxu0 %v1821_v28  ;;  %s1298_s5 = sshll.u32 %s1719_s2, 4  ;;  %s1299_s5 = int_to_ptr.vmem [resolvable:$true] %s1298_s5 }
  0x45   :  { %1563 = vmatmul.mubr.f32.gmra.mxu0 %v2005_v7  ;;  %1597 = vmatmul.mubr.f32.gmra.mxu1 %v2440_v25  ;;  %s1697_s6 = scalar_lea.vmem %s1299_s5, 2048  ;;  %p1702_p1 = scmp.lt.s32.totalorder %s1299_s5, %s1299_s5 }
  0x46   :  { %1659 = vmatpush3.msra.mxu1 %v1755_v5  ;;  %1565 = vmatprep.mubr.f32.mxu0 %v2027_v15  ;;  %v2443_v5 = vand.u32 4294901760, %v1993_v50  ;;  %p1698_p0 = scmp.ne.s32.totalorder %s1299_s5, %s1697_s6  ;;  %p1703_p2 = scmp.lt.s32.totalorder %s1697_s6, %s1697_s6 }
  0x47   :  { %1599 = vmatprep.mubr.f32.mxu1 %v2441_v4  ;;  %1621 = vmatpush3.msra.mxu0 %v1821_v28  ;;  %v2444_v28 = vand.u32 4294901760, %v2005_v7 }
  0x48   :  { %1660 = vmatprep.subr.mxu1 %v1766_v9  ;;  %1622 = vmatprep.subr.mxu0 %v1848_v38  ;;  %p1704_p3 = por %p1703_p2, %p1702_p1 }
  0x49   :  { %1566 = vmatmul.mubr.f32.gmra.mxu0 %v2030_v22  ;;  %1600 = vmatmul.mubr.f32.gmra.mxu1 %v2442_v26 }
  0x4a   :  { %1661 = vmatpush3.msra.mxu1 %v1766_v9  ;;  %1568 = vmatprep.mubr.f32.mxu0 %v2042_v60  ;;  %v2445_v9 = vand.u32 4294901760, %v2027_v15  ;;  %p1705_p4 = pnand %p1704_p3, %p1698_p0 }
  0x4b   :  { %1602 = vmatprep.mubr.f32.mxu1 %v2443_v5  ;;  %1623 = vmatpush3.msra.mxu0 %v1848_v38 }
  0x4c   :  { %1662 = vmatprep.subr.mxu1 %v1768_v10  ;;  %1624 = vmatprep.subr.mxu0 %v1851_v39 }
  0x4d   :  { %1569 = vmatmul.mubr.f32.gmra.mxu0 %v2056_v45  ;;  %1603 = vmatmul.mubr.f32.gmra.mxu1 %v2444_v28 }
  0x4e   :  { %1663 = vmatpush3.msra.mxu1 %v1768_v10  ;;  %1571 = vmatprep.mubr.f32.mxu0 %v2067_v52  ;;  %v2447_v10 = vmov %v2434_v16 }
  0x4f   :  { %1605 = vmatprep.mubr.f32.mxu1 %v2445_v9  ;;  %1625 = vmatpush3.msra.mxu0 %v1851_v39 }
  0x50   :  { %1626 = vmatprep.subr.mxu0 %v1895_v62  ;;  %1664 = vmatprep.subr.mxu1 %v1770_v11 }
  0x51   :  { %1572 = vmatmul.mubr.f32.gmra.mxu0 %v2080_v56  ;;  %1606 = vmatmul.mubr.f32.gmra.mxu1 %v2446_v35 }
  0x52   :  { %1627 = vmatpush3.msra.mxu0 %v1895_v62  ;;  %1665 = vmatpush3.msra.mxu1 %v1770_v11  ;;  %v2448_v11 = vld [vmem:[#allocation5_spill] sm:$0xff] }
  0x53   :  { %1628 = vmatprep.subr.mxu0 %v1920_v14  ;;  %1608 = vmatprep.mubr.f32.mxu1 %v2447_v10 }
  0x54   :  { %1629 = vmatpush3.msra.mxu0 %v1920_v14  ;;  %1630 = vmatprep.mubr.f32.mxu0 %v1817_v27 }
  0x55   :  { %1609 = vmatmul.mubr.f32.gmra.mxu1 %v300_v57  ;;  %1631 = vmatmul.mubr.f32.vlgmr.msra.gmra.mxu0 %v1823_v29 }
  0x56   :  { %1666 = vmatprep.subr.mxu1 %v1790_v17  ;;  %1611 = vmatprep.mubr.f32.mxu1 %v310_v1 }
  0x57   :  { %1667 = vmatpush3.msra.mxu1 %v1790_v17  ;;  %1633 = vmatprep.mubr.f32.mxu0 %v1889_v59 }
  0x58   :  { %1668 = vmatprep.subr.mxu1 %v1800_v20 }
  0x59   :  { %1612 = vmatmul.mubr.f32.gmra.mxu1 %v320_v19  ;;  %1634 = vmatmul.mubr.f32.gmra.mxu0 %v1892_v61 }
  0x5a   :  { %1669 = vmatpush3.msra.mxu1 %v1800_v20  ;;  %1636 = vmatprep.mubr.f32.mxu0 %v2448_v11 }
  0x5b   :  { %1670 = vmatprep.mubr.f32.mxu1 %v1817_v27 }
  0x5d   :  { %1637 = vmatmul.mubr.f32.gmra.mxu0 %v1926_v23  ;;  %1671 = vmatmul.mubr.f32.vlgmr.msra.gmra.mxu1 %v1823_v29 }
  0x5e   :  { %1639 = vmatprep.mubr.f32.mxu0 %v1947_v48  ;;  %1673 = vmatprep.mubr.f32.mxu1 %v1889_v59 }
  0x61   :  { %1640 = vmatmul.mubr.f32.gmra.mxu0 %v1949_v49  ;;  %1674 = vmatmul.mubr.f32.gmra.mxu1 %v1892_v61 }
  0x62   :  { %1642 = vmatprep.mubr.f32.mxu0 %v1977_v13  ;;  %1676 = vmatprep.mubr.f32.mxu1 %v2448_v11 }
  0x65   :  { %1643 = vmatmul.mubr.f32.gmra.mxu0 %v1986_v41  ;;  %1677 = vmatmul.mubr.f32.gmra.mxu1 %v1926_v23 }
  0x66   :  { %1645 = vmatprep.mubr.f32.mxu0 %v2011_v2  ;;  %1679 = vmatprep.mubr.f32.mxu1 %v1947_v48 }
  0x69   :  { %1646 = vmatmul.mubr.f32.gmra.mxu0 %v2013_v8  ;;  %1680 = vmatmul.mubr.f32.gmra.mxu1 %v1949_v49 }
  0x6a   :  { %1648 = vmatprep.mubr.f32.mxu0 %v2021_v43  ;;  %1682 = vmatprep.mubr.f32.mxu1 %v1977_v13 }
  0x6d   :  { %1649 = vmatmul.mubr.f32.gmra.mxu0 %v2044_v51  ;;  %1683 = vmatmul.mubr.f32.gmra.mxu1 %v1986_v41 }
  0x6e   :  { %1651 = vmatprep.mubr.f32.mxu0 %v2050_v47  ;;  %1685 = vmatprep.mubr.f32.mxu1 %v2011_v2 }
  0x71   :  { %1652 = vmatmul.mubr.f32.gmra.mxu0 %v2069_v40  ;;  %1686 = vmatmul.mubr.f32.gmra.mxu1 %v2013_v8 }
  0x72   :  { %1688 = vmatprep.mubr.f32.mxu1 %v2021_v43 }
  0x75   :  { %1689 = vmatmul.mubr.f32.gmra.mxu1 %v2044_v51 }
  0x76   :  { %1691 = vmatprep.mubr.f32.mxu1 %v2050_v47 }
  0x79   :  { %1692 = vmatmul.mubr.f32.gmra.mxu1 %v2069_v40 }
  0xd4   :  { %v1472_v17 = vpop.f32.mrf.mxu0 }
  0xd5   :  { %v185_v28 = vadd.f32 %v1472_v17, %v2323_v3 }
  0xd6   :  { %v2238_v20 = vpop.f32.mrf.mxu0 }
  0xd8   :  { %v2240_v27 = vpop.f32.mrf.mxu0 }
  0xda   :  { %v2242_v29 = vpop.f32.mrf.mxu0 }
  0xdc   :  { %v2244_v37 = vpop.f32.mrf.mxu0 }
  0xdd   :  { %v1512_v38 = vpop.f32.mrf.mxu1  ;;  %v225_v17 = vadd.f32 %v2244_v37, %v2323_v3 }
  0xde   :  { %v2246_v39 = vpop.f32.mrf.mxu0 }
  0xdf   :  { %v435_v45 = vpop.f32.mrf.mxu1  ;;  %v215_v37 = vadd.f32 %v2323_v3, %v2246_v39 }
  0xe0   :  { %v2248_v59 = vpop.f32.mrf.mxu0 }
  0xe1   :  { %v2250_v61 = vpop.f32.mrf.mxu1 }
  0xe2   :  { %v2252_v47 = vpop.f32.mrf.mxu0 }
  0xe3   :  { %v2254_v62 = vpop.f32.mrf.mxu1 }
  0xe4   :  { %v2256_v63 = vpop.f32.mrf.mxu0 }
  0xe5   :  { %v2258_v6 = vpop.f32.mrf.mxu1 }
  0xe6   :  { %v2260_v12 = vpop.f32.mrf.mxu0 }
  0xe7   :  { %v2262_v14 = vpop.f32.mrf.mxu1 }
  0xe8   :  { %v2264_v19 = vpop.f32.mrf.mxu0 }
  0xe9   :  { %v2266_v22 = vpop.f32.mrf.mxu1 }
  0xea   :  { %v2268_v23 = vpop.f32.mrf.mxu0 }
  0xeb   :  { %v2270_v42 = vpop.f32.mrf.mxu1 }
  0xec   :  { %v2272_v44 = vpop.f32.mrf.mxu0 }
  0xed   :  { %v2274_v48 = vpop.f32.mrf.mxu1 }
  0xee   :  { %v2276_v49 = vpop.f32.mrf.mxu0 }
  0xef   :  { %v2278_v0 = vpop.f32.mrf.mxu1 }
  0xf0   :  { %v2280_v46 = vpop.f32.mrf.mxu0 }
  0xf1   :  { %v2282_v13 = vpop.f32.mrf.mxu1 }
  0xf2   :  { %v2284_v41 = vpop.f32.mrf.mxu0 }
  0xf3   :  { %2449 = vst [vmem:[#allocation5_spill] sm:$0xff] %v2284_v41  ;;  %v2286_v50 = vpop.f32.mrf.mxu1 }
  0xf5   :  { %v2288_v7 = vpop.f32.mrf.mxu1  ;;  %v1552_v1 = vpop.f32.mrf.mxu0 }
  0xf7   :  { %v2290_v2 = vpop.f32.mrf.mxu1  ;;  %v613_v8 = vpop.f32.mrf.mxu0 }
  0xf8   :  { %2450 = vst [vmem:[#allocation6_spill] sm:$0xff] %v2290_v2 }
  0xf9   :  { %v2292_v40 = vpop.f32.mrf.mxu1  ;;  %v1555_v43 = vpop.f32.mrf.mxu0 }
  0xfa   :  { %2451 = vst [vmem:[#allocation7_spill] sm:$0xff] %v2292_v40  ;;  %v442_v40 = vadd.f32 %v1512_v38, %v185_v28 }
  0xfb   :  { %v2294_v15 = vpop.f32.mrf.mxu1  ;;  %v627_v60 = vpop.f32.mrf.mxu0 }
  0xfc   :  { %2452 = vst [vmem:[#allocation8_spill] sm:$0xff] %v2294_v15  ;;  %v175_v15 = vadd.f32 %v2323_v3, %v2238_v20  ;;  %v621_v2 = vadd.f32 %v1552_v1, %v442_v40 }
  0xfd   :  { %v1558_v51 = vpop.f32.mrf.mxu0  ;;  %v1592_v52 = vpop.f32.mrf.mxu1 }
  0xff   :  { %v2296_v57 = vpop.f32.mrf.mxu0  ;;  %v799_v54 = vpop.f32.mrf.mxu1 }
 0x101   :  { %v2298_v16 = vpop.f32.mrf.mxu0  ;;  %v1595_v56 = vpop.f32.mrf.mxu1 }
 0x103   :  { %v2300_v58 = vpop.f32.mrf.mxu0  ;;  %v815_v36 = vpop.f32.mrf.mxu1 }
 0x105   :  { %v2302_v18 = vpop.f32.mrf.mxu0  ;;  %v1598_v33 = vpop.f32.mrf.mxu1 }
 0x107   :  { %v2304_v34 = vpop.f32.mrf.mxu0  ;;  %v2306_v32 = vpop.f32.mrf.mxu1 }
 0x109   :  { %v2308_v55 = vpop.f32.mrf.mxu0  ;;  %v2310_v21 = vpop.f32.mrf.mxu1 }
 0x10b   :  { %v2312_v30 = vpop.f32.mrf.mxu0  ;;  %v2314_v31 = vpop.f32.mrf.mxu1 }
 0x10c   :  { %2453 = vst [vmem:[#allocation9_spill] sm:$0xff] %v2312_v30  ;;  %v808_v30 = vadd.f32 %v1592_v52, %v621_v2 }
 0x10d   :  { %v2316_v53 = vpop.f32.mrf.mxu0  ;;  %v2318_v24 = vpop.f32.mrf.mxu1 }
 0x10e   :  { %2454 = vst [vmem:[#allocation10_spill] sm:$0xff] %v2316_v53  ;;  %v436_v53 = vadd.f32 %v435_v45, %v175_v15  ;;  %v245_v15 = vadd.f32 %v2248_v59, %v2323_v3  ;;  %v235_v59 = vadd.f32 %v2323_v3, %v2252_v47 }
 0x10f   :  { %v2325_v25 = vpop.f32.mrf.mxu0  ;;  %v2327_v4 = vpop.f32.mrf.mxu1 }
 0x110   :  { %2455 = vst [vmem:[#allocation11_spill] sm:$0xff] %v2325_v25  ;;  %v205_v25 = vadd.f32 %v2240_v27, %v2323_v3 }
 0x111   :  { %v2329_v26 = vpop.f32.mrf.mxu0  ;;  %v2331_v5 = vpop.f32.mrf.mxu1 }
 0x112   :  { %2456 = vst [vmem:[#allocation12_spill] sm:$0xff] %v2329_v26  ;;  %2457 = vst [vmem:[#allocation13_spill] sm:$0xff] %v2331_v5  ;;  %v454_v20 = vadd.f32 %v2250_v61, %v205_v25  ;;  %v614_v5 = vadd.f32 %v613_v8, %v436_v53  ;;  %v460_v25 = vadd.f32 %v2262_v14, %v215_v37 }
 0x113   :  { %v2334_v9 = vpop.f32.mrf.mxu0  ;;  %v2336_v35 = vpop.f32.mrf.mxu1 }
 0x114   :  { %2458 = vst [vmem:[#allocation14_spill] sm:$0xff] %v2334_v9  ;;  %2459 = vst [vmem:[#allocation15_spill] sm:$0xff] %v2336_v35  ;;  %v635_v45 = vadd.f32 %v1555_v43, %v454_v20  ;;  %v800_v1 = vadd.f32 %v799_v54, %v614_v5 }
 0x115   :  { %v2338_v10 = vpop.f32.mrf.mxu1  ;;  %v1632_v11 = vpop.f32.mrf.mxu0 }
 0x116   :  { %2460 = vst [vmem:[#allocation16_spill] sm:$0xff] %v2338_v10  ;;  %v195_v10 = vadd.f32 %v2323_v3, %v2242_v29  ;;  %v1021_v40 = vadd.f32 %v1632_v11, %v808_v30  ;;  %v466_v29 = vadd.f32 %v2258_v6, %v225_v17  ;;  %v824_v2 = vadd.f32 %v1595_v56, %v635_v45 }
 0x117   :  { %v2344_v41 = vpop.f32.mrf.mxu1  ;;  %v1014_v26 = vpop.f32.mrf.mxu0  ;;  %v265_v6 = vadd.f32 %v2256_v63, %v2323_v3 }
 0x118   :  { %v448_v28 = vadd.f32 %v2254_v62, %v195_v10  ;;  %v1015_v52 = vadd.f32 %v1014_v26, %v800_v1  ;;  %v649_v54 = vadd.f32 %v1558_v51, %v466_v29  ;;  %v642_v10 = vadd.f32 %v2296_v57, %v460_v25 }
 0x119   :  { %v2348_v9 = vpop.f32.mrf.mxu1  ;;  %v1635_v35 = vpop.f32.mrf.mxu0  ;;  %v285_v57 = vadd.f32 %v2264_v19, %v2323_v3  ;;  %v275_v29 = vadd.f32 %v2323_v3, %v2268_v23 }
 0x11a   :  { %2461 = vst [vmem:[#allocation17_spill] sm:$0xff] %v2348_v9  ;;  %v628_v8 = vadd.f32 %v627_v60, %v448_v28  ;;  %v1033_v5 = vadd.f32 %v1635_v35, %v824_v2  ;;  %v478_v60 = vadd.f32 %v2266_v22, %v245_v15  ;;  %v840_v14 = vadd.f32 %v1598_v33, %v649_v54 }
 0x11b   :  { %v2353_v27 = vpop.f32.mrf.mxu1  ;;  %v1026_v38 = vpop.f32.mrf.mxu0  ;;  %v832_v47 = vadd.f32 %v2306_v32, %v642_v10  ;;  %v255_v22 = vadd.f32 %v2323_v3, %v2260_v12  ;;  %v490_v33 = vadd.f32 %v2274_v48, %v265_v6  ;;  %v2464_v6 = vld [vmem:[#allocation6_spill] sm:$0xff] }
 0x11c   :  { %v816_v30 = vadd.f32 %v815_v36, %v628_v8  ;;  %v472_v36 = vadd.f32 %v2270_v42, %v235_v59  ;;  %v663_v20 = vadd.f32 %v2298_v16, %v478_v60  ;;  %v2465_v10 = vld [vmem:[#allocation10_spill] sm:$0xff] }
 0x11d   :  { %v1638_v9 = vpop.f32.mrf.mxu0  ;;  %v1672_v61 = vpop.f32.mrf.mxu1  ;;  %v677_v12 = vadd.f32 %v2302_v18, %v490_v33 }
 0x11e   :  { %v1190_v53 = vadd.f32 %v1672_v61, %v1021_v40  ;;  %v1027_v11 = vadd.f32 %v1026_v38, %v816_v30  ;;  %v1045_v28 = vadd.f32 %v1638_v9, %v840_v14  ;;  %v656_v42 = vadd.f32 %v2300_v58, %v472_v36  ;;  %v2466_v14 = vld [vmem:[#allocation15_spill] sm:$0xff] }
 0x11f   :  { %v1038_v62 = vpop.f32.mrf.mxu0  ;;  %v1183_v43 = vpop.f32.mrf.mxu1  ;;  %v856_v1 = vadd.f32 %v2310_v21, %v663_v20  ;;  %v484_v9 = vadd.f32 %v2278_v0, %v255_v22  ;;  %v305_v58 = vadd.f32 %v2272_v44, %v2323_v3  ;;  %v502_v21 = vadd.f32 %v2282_v13, %v285_v57 }
 0x120   :  { %1278 = vst [vmem:[#allocation2 + $0x8] sm:$0xff] %v1190_v53  ;;  %v1184_v39 = vadd.f32 %v1183_v43, %v1015_v52  ;;  %v1039_v16 = vadd.f32 %v1038_v62, %v832_v47  ;;  %v848_v15 = vadd.f32 %v2314_v31, %v656_v42  ;;  %v872_v2 = vadd.f32 %v2318_v24, %v677_v12  ;;  %v2469_v47 = vld [vmem:[#allocation11_spill] sm:$0xff]  ;;  %v2473_v12 = vld [vmem:[#allocation14_spill] sm:$0xff] }
 0x121   :  { %v1641_v56 = vpop.f32.mrf.mxu0  ;;  %v1675_v26 = vpop.f32.mrf.mxu1  ;;  %v670_v0 = vadd.f32 %v2304_v34, %v484_v9  ;;  %v496_v52 = vadd.f32 %v2286_v50, %v275_v29  ;;  %v691_v23 = vadd.f32 %v2308_v55, %v502_v21  ;;  %v295_v43 = vadd.f32 %v2323_v3, %v2276_v49  ;;  %v2462_v50 = vld [vmem:[#allocation9_spill] sm:$0xff] }
 0x122   :  { %1277 = vst [vmem:[#allocation2] sm:$0xff] %v1184_v39  ;;  %v1202_v51 = vadd.f32 %v1675_v26, %v1033_v5  ;;  %v1057_v19 = vadd.f32 %v1641_v56, %v856_v1  ;;  %v325_v34 = vadd.f32 %v2280_v46, %v2323_v3  ;;  %v514_v24 = vadd.f32 %v2288_v7, %v305_v58  ;;  %v2463_v39 = vld [vmem:[#allocation13_spill] sm:$0xff] }
 0x123   :  { %v1050_v35 = vpop.f32.mrf.mxu0  ;;  %v1195_v17 = vpop.f32.mrf.mxu1  ;;  %v864_v62 = vadd.f32 %v2327_v4, %v670_v0  ;;  %v684_v5 = vadd.f32 %v2462_v50, %v496_v52  ;;  %v888_v59 = vadd.f32 %v2463_v39, %v691_v23  ;;  %v508_v60 = vadd.f32 %v2464_v6, %v295_v43 }
 0x124   :  { %1280 = vst [vmem:[#allocation2 + $0x18] sm:$0xff] %v1202_v51  ;;  %v1196_v63 = vadd.f32 %v1195_v17, %v1027_v11  ;;  %v1051_v18 = vadd.f32 %v1050_v35, %v848_v15  ;;  %v705_v49 = vadd.f32 %v2465_v10, %v514_v24  ;;  %v2467_v51 = vld [vmem:[#allocation5_spill] sm:$0xff]  ;;  %v2468_v35 = vld [vmem:[#allocation7_spill] sm:$0xff] }
 0x125   :  { %v1644_v38 = vpop.f32.mrf.mxu0  ;;  %v1678_v45 = vpop.f32.mrf.mxu1  ;;  %v880_v11 = vadd.f32 %v2466_v14, %v684_v5  ;;  %v315_v36 = vadd.f32 %v2323_v3, %v2467_v51  ;;  %v526_v17 = vadd.f32 %v2468_v35, %v325_v34 }
 0x126   :  { %1279 = vst [vmem:[#allocation2 + $0x10] sm:$0xff] %v1196_v63  ;;  %v1214_v32 = vadd.f32 %v1678_v45, %v1045_v28  ;;  %v1069_v44 = vadd.f32 %v1644_v38, %v872_v2  ;;  %v698_v28 = vadd.f32 %v2469_v47, %v508_v60  ;;  %v2470_v63 = vld [vmem:[#allocation16_spill] sm:$0xff] }
 0x127   :  { %v1062_v40 = vpop.f32.mrf.mxu0  ;;  %v1207_v37 = vpop.f32.mrf.mxu1  ;;  %v904_v22 = vadd.f32 %v2470_v63, %v705_v49  ;;  %v2471_v38 = vld [vmem:[#allocation8_spill] sm:$0xff] }
 0x128   :  { %1282 = vst [vmem:[#allocation2 + $0x28] sm:$0xff] %v1214_v32  ;;  %v1208_v48 = vadd.f32 %v1207_v37, %v1039_v16  ;;  %v1063_v55 = vadd.f32 %v1062_v40, %v864_v62  ;;  %v520_v45 = vadd.f32 %v2471_v38, %v315_v36  ;;  %v2472_v16 = vld [vmem:[#allocation12_spill] sm:$0xff]  ;;  %v896_v9 = vadd.f32 %v2344_v41, %v698_v28 }
 0x129   :  { %v1647_v61 = vpop.f32.mrf.mxu0  ;;  %v1681_v8 = vpop.f32.mrf.mxu1  ;;  %v719_v32 = vadd.f32 %v2472_v16, %v526_v17 }
 0x12a   :  { %1281 = vst [vmem:[#allocation2 + $0x20] sm:$0xff] %v1208_v48  ;;  %v1226_v31 = vadd.f32 %v1681_v8, %v1057_v19  ;;  %v1081_v46 = vadd.f32 %v1647_v61, %v888_v59  ;;  %v712_v15 = vadd.f32 %v2473_v12, %v520_v45  ;;  %v2474_v19 = vld [vmem:[#allocation17_spill] sm:$0xff] }
 0x12b   :  { %v1074_v53 = vpop.f32.mrf.mxu0  ;;  %v1219_v25 = vpop.f32.mrf.mxu1  ;;  %v920_v48 = vadd.f32 %v2474_v19, %v719_v32 }
 0x12c   :  { %1284 = vst [vmem:[#allocation2 + $0x38] sm:$0xff] %v1226_v31  ;;  %v1220_v13 = vadd.f32 %v1219_v25, %v1051_v18  ;;  %v1075_v57 = vadd.f32 %v1074_v53, %v880_v11  ;;  %v912_v8 = vadd.f32 %v2353_v27, %v712_v15 }
 0x12d   :  { %v1650_v54 = vpop.f32.mrf.mxu0  ;;  %v1684_v30 = vpop.f32.mrf.mxu1 }
 0x12e   :  { %1283 = vst [vmem:[#allocation2 + $0x30] sm:$0xff] %v1220_v13  ;;  %v1238_v4 = vadd.f32 %v1684_v30, %v1069_v44  ;;  %v1093_v40 = vadd.f32 %v1650_v54, %v904_v22 }
 0x12f   :  { %v1086_v56 = vpop.f32.mrf.mxu0  ;;  %v1231_v26 = vpop.f32.mrf.mxu1 }
 0x130   :  { %1286 = vst [vmem:[#allocation2 + $0x48] sm:$0xff] %v1238_v4  ;;  %v1232_v7 = vadd.f32 %v1231_v26, %v1063_v55  ;;  %v1087_v29 = vadd.f32 %v1086_v56, %v896_v9 }
 0x131   :  { %v1687_v20 = vpop.f32.mrf.mxu1  ;;  %v1653_v42 = vpop.f32.mrf.mxu0 }
 0x132   :  { %1285 = vst [vmem:[#allocation2 + $0x40] sm:$0xff] %v1232_v7  ;;  %v1250_v33 = vadd.f32 %v1687_v20, %v1081_v46  ;;  %v1105_v0 = vadd.f32 %v1653_v42, %v920_v48 }
 0x133   :  { %v1243_v1 = vpop.f32.mrf.mxu1  ;;  %v1098_v21 = vpop.f32.mrf.mxu0 }
 0x134   :  { %1288 = vst [vmem:[#allocation2 + $0x58] sm:$0xff] %v1250_v33  ;;  %v1244_v3 = vadd.f32 %v1243_v1, %v1075_v57  ;;  %v1099_v18 = vadd.f32 %v1098_v21, %v912_v8 }
 0x135   :  { %v1690_v37 = vpop.f32.mrf.mxu1 }
 0x136   :  { %1287 = vst [vmem:[#allocation2 + $0x50] sm:$0xff] %v1244_v3  ;;  %v1262_v58 = vadd.f32 %v1690_v37, %v1093_v40 }
 0x137   :  { %v1255_v61 = vpop.f32.mrf.mxu1 }
 0x138   :  { %1290 = vst [vmem:[#allocation2 + $0x68] sm:$0xff] %v1262_v58  ;;  %v1256_v2 = vadd.f32 %v1255_v61, %v1087_v29 }
 0x139   :  { %v1693_v41 = vpop.f32.mrf.mxu1 }
 0x13a   :  { %1289 = vst [vmem:[#allocation2 + $0x60] sm:$0xff] %v1256_v2  ;;  %v1274_v31 = vadd.f32 %v1693_v41, %v1105_v0 }
 0x13b   :  { %v1267_v52 = vpop.f32.mrf.mxu1 }
 0x13c   :  { %1292 = vst [vmem:[#allocation2 + $0x78] sm:$0xff] %v1274_v31  ;;  %v1268_v53 = vadd.f32 %v1267_v52, %v1099_v18 }
 0x13e   :  { %1291 = vst [vmem:[#allocation2 + $0x70] sm:$0xff] %v1268_v53 }
 0x13f   :  { %1708 = shalt.err (!%p1705_p4)
}
 0x140   :  { %s1720_s7 = smov 128   ;;  %s1721_s8 = smov 8  }
 0x141   :  { %1304 = dma.vmem_to_hbm [thread:$0]  %s1299_s5, 2048, %s2418_s3, [#allocation3], %s1720_s7, %s1720_s7, %s1721_s8  }
 0x142   :  { %1717 = dma.done.wait [#allocation3], 2048  }
 0x143   :  { %1718 = vsyncadd [#allocation3], 4294965248 }
 0x144   :  { %1308 = vsyncpa [#allocation3], 1 }

</bundles_post_ra>
